<compile_context>
chip_gen: v6e
topology: v6e:2x2x1
jax: 0.10.0
libtpu: 0.0.40
codegen_flags: <defaults>
</compile_context>

<pallas_src>
import math

import jax
import jax.numpy as jnp
import numpy as np
from jax.experimental import pallas as pl
from jax.experimental.pallas import tpu as pltpu


def my_embedding_kernel(pck_idx_ref, seg_idx_ref, rel_pos_ref, abs_pe_ref,
                        div_ref, phase_ref, pck_tab_ref, seg_tab_ref,
                        gamma_ref, beta_ref, out_ref):
    # out_ref block: (1, TS, D)
    TS = out_ref.shape[1]
    D = out_ref.shape[2]
    V = pck_tab_ref.shape[0]
    NSEG = seg_tab_ref.shape[0]

    # ---- packet (value) embedding: one-hot matmul on the MXU ----------------
    # TODO(synk): for large vocabularies keep pck_tab in HBM
    # (BlockSpec(memory_space=pl.ANY)) and DMA-gather the needed rows
    # (scalar-prefetch + pl.Element) instead of a (TS,V)x(V,D) matmul with the
    # full table resident in VMEM; optionally feed bf16 operands with f32 accum.
    pck_idx = pck_idx_ref[0]                                       # (TS, 1) i32
    onehot_p = (pck_idx ==
                jax.lax.broadcasted_iota(jnp.int32, (TS, V), 1)
                ).astype(jnp.float32)                              # (TS, V)
    pck_emb = jnp.dot(onehot_p, pck_tab_ref[...],
                      preferred_element_type=jnp.float32)          # (TS, D)

    # ---- segment embedding: VPU select for the common NSEG == 2 case --------
    seg_idx = seg_idx_ref[0]                                       # (TS, 1) i32
    if NSEG == 2:
        seg_emb = jnp.where(seg_idx == 0,
                            seg_tab_ref[0:1, :], seg_tab_ref[1:2, :])  # (TS, D)
    else:  # generic fallback: small one-hot matmul
        onehot_s = (seg_idx ==
                    jax.lax.broadcasted_iota(jnp.int32, (TS, NSEG), 1)
                    ).astype(jnp.float32)
        seg_emb = jnp.dot(onehot_s, seg_tab_ref[...],
                          preferred_element_type=jnp.float32)

    # ---- relative positional encoding: ONE sin() via the phase-shift trick --
    #   even lanes: sin(angle)    odd lanes: cos(angle) == sin(angle + pi/2)
    rel_pos = rel_pos_ref[0]                                       # (TS, 1) f32
    rel_pe = jnp.sin(rel_pos * div_ref[...] + phase_ref[...])      # (TS, D)

    # absolute PE is grid-invariant and was precomputed in the wrapper.
    total = pck_emb + seg_emb + rel_pe + abs_pe_ref[...]           # (TS, D) f32

    # ---- LayerNorm over D: fused single-pass sum / sum-of-squares -----------
    inv_d = jnp.float32(1.0 / D)
    s1 = jnp.sum(total, axis=-1, keepdims=True)
    s2 = jnp.sum(total * total, axis=-1, keepdims=True)
    mean = s1 * inv_d
    var = s2 * inv_d - mean * mean
    inv = jax.lax.rsqrt(var + 1e-5)
    normed = (total - mean) * inv * gamma_ref[...] + beta_ref[...]

    out_ref[0] = normed.astype(out_ref.dtype)   # no reshape before the store


def _choose_seq_tile(S):
    """Largest sequence tile <= 512 that divides S (bounds VMEM/vreg pressure)."""
    if S <= 512:
        return S
    for ts in (512, 256, 128, 64, 32, 16, 8):
        if S % ts == 0:
            return ts
    return S


def my_embedding_forward(x, seg, ret_pos, value2token_offset,
                         pck_tab, seg_tab, gamma, beta):
    """x, seg: int [B, S]; ret_pos: float [B, S]. Returns float32 [B, S, D]."""
    B, S = x.shape
    V, D = pck_tab.shape
    NSEG = seg_tab.shape[0]
    TS = _choose_seq_tile(S)
    n_s = pl.cdiv(S, TS)

    # -------- grid-invariant constants, hoisted out of the kernel ------------
    half = np.exp(np.arange(0, D, 2, dtype=np.float32) * (-math.log(10000.0) / D))
    div_full = np.repeat(half, 2).reshape(1, D).astype(np.float32)        # (1, D)
    phase = np.tile(np.array([0.0, math.pi / 2.0], np.float32),
                    D // 2).reshape(1, D)                                  # (1, D)
    pos = np.arange(S, dtype=np.float32).reshape(S, 1)
    abs_pe = np.sin(pos * div_full + phase).astype(np.float32)             # (S, D)

    # glue: index offset + reshapes so in-kernel refs are already (TS,1)/(1,D)
    pck_idx = (x + value2token_offset).astype(jnp.int32).reshape(B, S, 1)
    seg_idx = seg.astype(jnp.int32).reshape(B, S, 1)
    rel = ret_pos.astype(jnp.float32).reshape(B, S, 1)
    gamma2 = gamma.astype(jnp.float32).reshape(1, D)
    beta2 = beta.astype(jnp.float32).reshape(1, D)

    return pl.pallas_call(
        my_embedding_kernel,
        out_shape=jax.ShapeDtypeStruct((B, S, D), jnp.float32),
        grid=(B, n_s),
        in_specs=[
            pl.BlockSpec((1, TS, 1), lambda b, s: (b, s, 0)),   # pck indices
            pl.BlockSpec((1, TS, 1), lambda b, s: (b, s, 0)),   # seg indices
            pl.BlockSpec((1, TS, 1), lambda b, s: (b, s, 0)),   # relative pos
            pl.BlockSpec((TS, D), lambda b, s: (s, 0)),         # absolute PE slab
            pl.BlockSpec((1, D), lambda b, s: (0, 0)),          # div_term (const)
            pl.BlockSpec((1, D), lambda b, s: (0, 0)),          # phase (const)
            pl.BlockSpec((V, D), lambda b, s: (0, 0)),          # pck table
            pl.BlockSpec((NSEG, D), lambda b, s: (0, 0)),       # seg table
            pl.BlockSpec((1, D), lambda b, s: (0, 0)),          # layernorm gamma
            pl.BlockSpec((1, D), lambda b, s: (0, 0)),          # layernorm beta
        ],
        out_specs=pl.BlockSpec((1, TS, D), lambda b, s: (b, s, 0)),
        compiler_params=pltpu.CompilerParams(
            # both axes are independent -> let megacore (v7x 2 TCs) shard both
            dimension_semantics=("parallel", "parallel")),
    )(pck_idx, seg_idx, rel, jnp.asarray(abs_pe), jnp.asarray(div_full),
      jnp.asarray(phase), pck_tab, seg_tab, gamma2, beta2)


def reference_forward(x, seg, ret_pos, offset, pck_tab, seg_tab, gamma, beta):
    """Pure NumPy reference mirroring the PyTorch module."""
    x = np.asarray(x); seg = np.asarray(seg); ret_pos = np.asarray(ret_pos, np.float32)
    pck_tab = np.asarray(pck_tab); seg_tab = np.asarray(seg_tab)
    gamma = np.asarray(gamma); beta = np.asarray(beta)
    B, S = x.shape
    V, D = pck_tab.shape

    pck_e = pck_tab[x + offset]                    # [B,S,D]
    seg_e = seg_tab[seg]                           # [B,S,D]

    div = np.exp(np.arange(0, D, 2, dtype=np.float32) * (-math.log(10000.0) / D))

    rel_ang = ret_pos[..., None] * div             # [B,S,D/2]
    rel_pe = np.stack([np.sin(rel_ang), np.cos(rel_ang)], -1).reshape(B, S, D)

    pos = np.arange(S, dtype=np.float32)[:, None]
    abs_ang = pos * div                            # [S,D/2]
    abs_pe = np.stack([np.sin(abs_ang), np.cos(abs_ang)], -1).reshape(S, D)

    total = pck_e + seg_e + rel_pe + abs_pe        # [B,S,D]
    mean = total.mean(-1, keepdims=True)
    var = ((total - mean) ** 2).mean(-1, keepdims=True)
    return (total - mean) / np.sqrt(var + 1e-5) * gamma + beta


if __name__ == "__main__":
    B, S, D = 2, 8, 128          # d_model=128 (module default) -> lane-dense output
    V, NSEG = 16, 2
    value2token_offset = 3

    key = jax.random.PRNGKey(0)
    k1, k2, k3, k4, k5 = jax.random.split(key, 5)

    # deterministic parameter init (nn.Embedding ~ N(0,1); LayerNorm ones/zeros)
    pck_tab = jax.random.normal(k1, (V, D), dtype=jnp.float32)
    seg_tab = jax.random.normal(k2, (NSEG, D), dtype=jnp.float32)
    gamma = jnp.ones((D,), dtype=jnp.float32)
    beta = jnp.zeros((D,), dtype=jnp.float32)

    # example inputs
    x = jax.random.randint(k3, (B, S), 0, V - value2token_offset, dtype=jnp.int32)
    seg = jax.random.randint(k4, (B, S), 0, NSEG, dtype=jnp.int32)
    ret_pos = jax.random.uniform(k5, (B, S), dtype=jnp.float32, minval=0.0, maxval=50.0)

    out = my_embedding_forward(x, seg, ret_pos, value2token_offset,
                               pck_tab, seg_tab, gamma, beta)
    out = jax.block_until_ready(out)

    ref = reference_forward(x, seg, ret_pos, value2token_offset,
                            pck_tab, seg_tab, gamma, beta)
    np.testing.assert_allclose(np.asarray(out), ref, rtol=2e-3, atol=2e-3)

    print("KERNEL_OK")
</pallas_src>

<mosaic_0001>
module attributes {stable_mosaic.version = 11 : i64} {
  func.func @my_embedding_kernel(%arg0: i32, %arg1: i32, %arg2: memref<1x8x1xi32, #tpu.memory_space<vmem>>, %arg3: memref<1x8x1xi32, #tpu.memory_space<vmem>>, %arg4: memref<1x8x1xf32, #tpu.memory_space<vmem>>, %arg5: memref<8x128xf32, #tpu.memory_space<vmem>>, %arg6: memref<1x128xf32, #tpu.memory_space<vmem>>, %arg7: memref<1x128xf32, #tpu.memory_space<vmem>>, %arg8: memref<16x128xf32, #tpu.memory_space<vmem>>, %arg9: memref<2x128xf32, #tpu.memory_space<vmem>>, %arg10: memref<1x128xf32, #tpu.memory_space<vmem>>, %arg11: memref<1x128xf32, #tpu.memory_space<vmem>>, %arg12: memref<1x8x128xf32, #tpu.memory_space<vmem>>) attributes {dimension_semantics = [#tpu.dimension_semantics<parallel>, #tpu.dimension_semantics<parallel>], iteration_bounds = array<i64: 2, 1>, scalar_prefetch = 0 : i64, scratch_operands = 0 : i64, tpu.core_type = #tpu.core_type<tc>, window_params = [{transform_indices = @transform_0, window_bounds = array<i64: 1, 8, 1>}, {transform_indices = @transform_1, window_bounds = array<i64: 1, 8, 1>}, {transform_indices = @transform_2, window_bounds = array<i64: 1, 8, 1>}, {transform_indices = @transform_3, window_bounds = array<i64: 8, 128>}, {pipeline_mode = #tpu.pipeline_mode<synchronous>, transform_indices = @transform_4, window_bounds = array<i64: 1, 128>}, {pipeline_mode = #tpu.pipeline_mode<synchronous>, transform_indices = @transform_5, window_bounds = array<i64: 1, 128>}, {pipeline_mode = #tpu.pipeline_mode<synchronous>, transform_indices = @transform_6, window_bounds = array<i64: 16, 128>}, {pipeline_mode = #tpu.pipeline_mode<synchronous>, transform_indices = @transform_7, window_bounds = array<i64: 2, 128>}, {pipeline_mode = #tpu.pipeline_mode<synchronous>, transform_indices = @transform_8, window_bounds = array<i64: 1, 128>}, {pipeline_mode = #tpu.pipeline_mode<synchronous>, transform_indices = @transform_9, window_bounds = array<i64: 1, 128>}, {transform_indices = @transform_10, window_bounds = array<i64: 1, 8, 128>}]} {
    %c0 = arith.constant 0 : index
    %c0_0 = arith.constant 0 : index
    %c0_1 = arith.constant 0 : index
    %0 = vector.load %arg2[%c0, %c0_0, %c0_1] : memref<1x8x1xi32, #tpu.memory_space<vmem>>, vector<1x8x1xi32>
    %1 = vector.shape_cast %0 : vector<1x8x1xi32> to vector<8x1xi32>
    %2 = tpu.iota {dimensions = array<i32: 1>} : vector<8x16xi32>
    %3 = vector.broadcast %1 : vector<8x1xi32> to vector<8x16xi32>
    %4 = arith.cmpi eq, %3, %2 : vector<8x16xi32>
    %5 = arith.extui %4 : vector<8x16xi1> to vector<8x16xi32>
    %6 = arith.sitofp %5 : vector<8x16xi32> to vector<8x16xf32>
    %c0_2 = arith.constant 0 : index
    %c0_3 = arith.constant 0 : index
    %7 = vector.load %arg8[%c0_2, %c0_3] : memref<16x128xf32, #tpu.memory_space<vmem>>, vector<16x128xf32>
    %cst = arith.constant dense<0.000000e+00> : vector<8x128xf32>
    %8 = tpu.matmul %6, %7, %cst {dimension_numbers = #tpu.dot_dimension_numbers<[1], [0], [0], [1], [0, 0, 1, 1], [], []>} : vector<8x16xf32>, vector<16x128xf32>, vector<8x128xf32> -> vector<8x128xf32>
    %c0_4 = arith.constant 0 : index
    %c0_5 = arith.constant 0 : index
    %c0_6 = arith.constant 0 : index
    %9 = vector.load %arg3[%c0_4, %c0_5, %c0_6] : memref<1x8x1xi32, #tpu.memory_space<vmem>>, vector<1x8x1xi32>
    %10 = vector.shape_cast %9 : vector<1x8x1xi32> to vector<8x1xi32>
    %c0_i32 = arith.constant 0 : i32
    %11 = vector.broadcast %c0_i32 : i32 to vector<8x1xi32>
    %12 = arith.cmpi eq, %10, %11 : vector<8x1xi32>
    %c0_7 = arith.constant 0 : index
    %c0_8 = arith.constant 0 : index
    %13 = vector.load %arg9[%c0_7, %c0_8] : memref<2x128xf32, #tpu.memory_space<vmem>>, vector<1x128xf32>
    %c1 = arith.constant 1 : index
    %c0_9 = arith.constant 0 : index
    %14 = vector.load %arg9[%c1, %c0_9] : memref<2x128xf32, #tpu.memory_space<vmem>>, vector<1x128xf32>
    %15 = vector.shape_cast %12 : vector<8x1xi1> to vector<8x1xi1>
    %16 = vector.broadcast %15 : vector<8x1xi1> to vector<8x128xi1>
    %17 = vector.shape_cast %13 : vector<1x128xf32> to vector<1x128xf32>
    %18 = vector.broadcast %17 : vector<1x128xf32> to vector<8x128xf32>
    %19 = vector.shape_cast %14 : vector<1x128xf32> to vector<1x128xf32>
    %20 = vector.broadcast %19 : vector<1x128xf32> to vector<8x128xf32>
    %21 = arith.select %16, %18, %20 : vector<8x128xi1>, vector<8x128xf32>
    %c0_10 = arith.constant 0 : index
    %c0_11 = arith.constant 0 : index
    %c0_12 = arith.constant 0 : index
    %22 = vector.load %arg4[%c0_10, %c0_11, %c0_12] : memref<1x8x1xf32, #tpu.memory_space<vmem>>, vector<1x8x1xf32>
    %23 = vector.shape_cast %22 : vector<1x8x1xf32> to vector<8x1xf32>
    %c0_13 = arith.constant 0 : index
    %c0_14 = arith.constant 0 : index
    %24 = vector.load %arg6[%c0_13, %c0_14] : memref<1x128xf32, #tpu.memory_space<vmem>>, vector<1x128xf32>
    %25 = vector.broadcast %23 : vector<8x1xf32> to vector<8x128xf32>
    %26 = vector.broadcast %24 : vector<1x128xf32> to vector<8x128xf32>
    %27 = arith.mulf %25, %26 : vector<8x128xf32>
    %c0_15 = arith.constant 0 : index
    %c0_16 = arith.constant 0 : index
    %28 = vector.load %arg7[%c0_15, %c0_16] : memref<1x128xf32, #tpu.memory_space<vmem>>, vector<1x128xf32>
    %29 = vector.broadcast %28 : vector<1x128xf32> to vector<8x128xf32>
    %30 = arith.addf %27, %29 : vector<8x128xf32>
    %31 = math.sin %30 : vector<8x128xf32>
    %32 = arith.addf %8, %21 : vector<8x128xf32>
    %33 = arith.addf %32, %31 : vector<8x128xf32>
    %c0_17 = arith.constant 0 : index
    %c0_18 = arith.constant 0 : index
    %34 = vector.load %arg5[%c0_17, %c0_18] : memref<8x128xf32, #tpu.memory_space<vmem>>, vector<8x128xf32>
    %35 = arith.addf %33, %34 : vector<8x128xf32>
    %cst_19 = arith.constant dense<0.000000e+00> : vector<8xf32>
    %36 = vector.multi_reduction <add>, %35, %cst_19 [1] : vector<8x128xf32> to vector<8xf32>
    %37 = vector.shape_cast %36 : vector<8xf32> to vector<8x1xf32>
    %38 = arith.mulf %35, %35 : vector<8x128xf32>
    %cst_20 = arith.constant dense<0.000000e+00> : vector<8xf32>
    %39 = vector.multi_reduction <add>, %38, %cst_20 [1] : vector<8x128xf32> to vector<8xf32>
    %40 = vector.shape_cast %39 : vector<8xf32> to vector<8x1xf32>
    %cst_21 = arith.constant 7.812500e-03 : f32
    %41 = vector.broadcast %cst_21 : f32 to vector<8x1xf32>
    %42 = arith.mulf %37, %41 : vector<8x1xf32>
    %cst_22 = arith.constant 7.812500e-03 : f32
    %43 = vector.broadcast %cst_22 : f32 to vector<8x1xf32>
    %44 = arith.mulf %40, %43 : vector<8x1xf32>
    %45 = arith.mulf %42, %42 : vector<8x1xf32>
    %46 = arith.subf %44, %45 : vector<8x1xf32>
    %cst_23 = arith.constant 9.99999974E-6 : f32
    %47 = vector.broadcast %cst_23 : f32 to vector<8x1xf32>
    %48 = arith.addf %46, %47 : vector<8x1xf32>
    %49 = math.rsqrt %48 : vector<8x1xf32>
    %50 = vector.broadcast %42 : vector<8x1xf32> to vector<8x128xf32>
    %51 = arith.subf %35, %50 : vector<8x128xf32>
    %52 = vector.broadcast %49 : vector<8x1xf32> to vector<8x128xf32>
    %53 = arith.mulf %51, %52 : vector<8x128xf32>
    %c0_24 = arith.constant 0 : index
    %c0_25 = arith.constant 0 : index
    %54 = vector.load %arg10[%c0_24, %c0_25] : memref<1x128xf32, #tpu.memory_space<vmem>>, vector<1x128xf32>
    %55 = vector.broadcast %54 : vector<1x128xf32> to vector<8x128xf32>
    %56 = arith.mulf %53, %55 : vector<8x128xf32>
    %c0_26 = arith.constant 0 : index
    %c0_27 = arith.constant 0 : index
    %57 = vector.load %arg11[%c0_26, %c0_27] : memref<1x128xf32, #tpu.memory_space<vmem>>, vector<1x128xf32>
    %58 = vector.broadcast %57 : vector<1x128xf32> to vector<8x128xf32>
    %59 = arith.addf %56, %58 : vector<8x128xf32>
    %c0_28 = arith.constant 0 : index
    %c0_29 = arith.constant 0 : index
    %c0_30 = arith.constant 0 : index
    %60 = vector.load %arg12[%c0_28, %c0_29, %c0_30] : memref<1x8x128xf32, #tpu.memory_space<vmem>>, vector<1x8x128xf32>
    %61 = vector.shape_cast %60 : vector<1x8x128xf32> to vector<8x128xf32>
    %62 = vector.shape_cast %59 : vector<8x128xf32> to vector<1x8x128xf32>
    tpu.vector_store %arg12[%c0_28, %c0_29, %c0_30], %62 {strides = array<i32>} : memref<1x8x128xf32, #tpu.memory_space<vmem>>, vector<1x8x128xf32>,
    return
  }
  func.func @transform_0(%arg0: i32, %arg1: i32) -> (i32, i32, i32) {
    %c0_i32 = arith.constant 0 : i32
    %c0_i32_0 = arith.constant 0 : i32
    return %arg0, %arg1, %c0_i32 : i32, i32, i32
  }
  func.func @transform_1(%arg0: i32, %arg1: i32) -> (i32, i32, i32) {
    %c0_i32 = arith.constant 0 : i32
    %c0_i32_0 = arith.constant 0 : i32
    return %arg0, %arg1, %c0_i32 : i32, i32, i32
  }
  func.func @transform_2(%arg0: i32, %arg1: i32) -> (i32, i32, i32) {
    %c0_i32 = arith.constant 0 : i32
    %c0_i32_0 = arith.constant 0 : i32
    return %arg0, %arg1, %c0_i32 : i32, i32, i32
  }
  func.func @transform_3(%arg0: i32, %arg1: i32) -> (i32, i32) {
    %c0_i32 = arith.constant 0 : i32
    %c0_i32_0 = arith.constant 0 : i32
    return %arg1, %c0_i32 : i32, i32
  }
  func.func @transform_4(%arg0: i32, %arg1: i32) -> (i32, i32) {
    %c0_i32 = arith.constant 0 : i32
    %c0_i32_0 = arith.constant 0 : i32
    %c0_i32_1 = arith.constant 0 : i32
    return %c0_i32, %c0_i32_0 : i32, i32
  }
  func.func @transform_5(%arg0: i32, %arg1: i32) -> (i32, i32) {
    %c0_i32 = arith.constant 0 : i32
    %c0_i32_0 = arith.constant 0 : i32
    %c0_i32_1 = arith.constant 0 : i32
    return %c0_i32, %c0_i32_0 : i32, i32
  }
  func.func @transform_6(%arg0: i32, %arg1: i32) -> (i32, i32) {
    %c0_i32 = arith.constant 0 : i32
    %c0_i32_0 = arith.constant 0 : i32
    %c0_i32_1 = arith.constant 0 : i32
    return %c0_i32, %c0_i32_0 : i32, i32
  }
  func.func @transform_7(%arg0: i32, %arg1: i32) -> (i32, i32) {
    %c0_i32 = arith.constant 0 : i32
    %c0_i32_0 = arith.constant 0 : i32
    %c0_i32_1 = arith.constant 0 : i32
    return %c0_i32, %c0_i32_0 : i32, i32
  }
  func.func @transform_8(%arg0: i32, %arg1: i32) -> (i32, i32) {
    %c0_i32 = arith.constant 0 : i32
    %c0_i32_0 = arith.constant 0 : i32
    %c0_i32_1 = arith.constant 0 : i32
    return %c0_i32, %c0_i32_0 : i32, i32
  }
  func.func @transform_9(%arg0: i32, %arg1: i32) -> (i32, i32) {
    %c0_i32 = arith.constant 0 : i32
    %c0_i32_0 = arith.constant 0 : i32
    %c0_i32_1 = arith.constant 0 : i32
    return %c0_i32, %c0_i32_0 : i32, i32
  }
  func.func @transform_10(%arg0: i32, %arg1: i32) -> (i32, i32, i32) {
    %c0_i32 = arith.constant 0 : i32
    %c0_i32_0 = arith.constant 0 : i32
    return %arg0, %arg1, %c0_i32 : i32, i32, i32
  }
}

</mosaic_0001>

<bundles_post_ra>
// kernel: tpu_custom_call.1
= control target key start
LH: loop header
LB: loop body
LE: loop exit
PB: predicated region body
PF: predicated region fallthrough
CT: control target
= control target key end

     0   :  { %s1263_s0 = inlined_call_operand.vmem [shape: s32[2,8,1], index: 0, kind: input, shape index: {}]   ;;  %s1264_s1 = inlined_call_operand.vmem [shape: s32[2,8,1], index: 1, kind: input, shape index: {}]   ;;  %s1265_s2 = inlined_call_operand.vmem [shape: f32[2,8,1], index: 2, kind: input, shape index: {}]   ;;  %s1266_s3 = inlined_call_operand.vmem [shape: f32[8,128], index: 3, kind: input, shape index: {}]   ;;  %s1267_s4 = inlined_call_operand.vmem [shape: f32[1,128], index: 4, kind: input, shape index: {}]   ;;  %s1268_s5 = inlined_call_operand.vmem [shape: f32[1,128], index: 5, kind: input, shape index: {}]   ;;  %s1269_s6 = inlined_call_operand.vmem [shape: f32[16,128], index: 6, kind: input, shape index: {}]   ;;  %s1270_s7 = inlined_call_operand.vmem [shape: f32[2,128], index: 7, kind: input, shape index: {}]   ;;  %s1271_s8 = inlined_call_operand.vmem [shape: f32[1,128], index: 8, kind: input, shape index: {}]   ;;  %s1272_s9 = inlined_call_operand.vmem [shape: f32[1,128], index: 9, kind: input, shape index: {}]   ;;  %s1273_s10 = inlined_call_operand.hbm [shape: f32[2,8,128], index: 10, kind: output, shape index: {}]  }
   0x1   :  { %1276 = sst [smem:[#allocation7_spill]] %s1263_s0 }
   0x2   :  { %1277 = sst [smem:[#allocation8_spill]] %s1264_s1 }
   0x3   :  { %15 = vsyncpa [#allocation3], 0 }
   0x4   :  { %17 = vsyncpa [#allocation3 + $0x1], 0  ;;  %s1101_s13 = smov 0   ;;  %s1103_s14 = smov 0  }
   0x5   :  { %s1105_s15 = smov 0   ;;  %s1107_s16 = smov 0  }
   0x6   :  { %s1109_s17 = smov 0   ;;  %s1111_s18 = smov 0  }
   0x7 LB: > { %1278 = sst [smem:[#allocation5_spill]] %s1030_s17  ;;  %s846_s19 = sadd.s32 4294967295, %s1034_s18   ;;  %s1034_s18 = sphi %s1111_s18, %s23_s18   ;;  %s1030_s17 = sphi %s1109_s17, %s1285_s17   ;;  %s1026_s16 = sphi %s1107_s16, %s1284_s16   ;;  %s1022_s15 = sphi %s1105_s15, %s1288_s15   ;;  %s1018_s14 = sphi %s1103_s14, %s1287_s14   ;;  %s1014_s13 = sphi %s1101_s13, %s1286_s13  }
   0x8   : > { %s847_s20 = sadd.s32 4294967294, %s1034_s18   ;;  %s35_s21 = sadd.s32 1, %s1030_s17 }
   0x9   : > { %s280_s22 = sadd.s32 1, %s1022_s15  ;;  %p37_p0 = scmp.ge.s32.totalorder %s35_s21, 2 }
   0xa   : > { %p290_p1 = scmp.ne.s32.totalorder %s1022_s15, %s1018_s14  ;;  %p291_p2 = scmp.eq.s32.totalorder %s846_s19, 1 }
   0xb   : > { %p296_p3 = scmp.ne.s32.totalorder %s1018_s14, %s1014_s13  ;;  %s1290_s21 = smov (%p37_p0, %s35_s21), 0 }
   0xc   : > { %1279 = sst [smem:[#allocation6_spill]] %s1290_s21  ;;  %p1141_p4 = por %p291_p2, %p290_p1 }
   0xd   : > { %p297_p5 = scmp.eq.s32.totalorder %s847_s20, 1  ;;  %s275_s24 = ssub.s32 %s1030_s17, %s1290_s21 }
   0xe   : > { %p851_p6 = scmp.ge.s32.totalorder %s1034_s18, 1  ;;  %p278_p7 = scmp.eq.s32.totalorder %s275_s24, 0 }
   0xf   : > { %p1148_p8 = por %p297_p5, %p296_p3  ;;  %p370_p9 = scmp.lt.s32.totalorder %s1034_s18, 3 }
  0x10   : > { %s1154_s26 = scalar_select %p278_p7, %s1022_s15, %s280_s22  }
  0x11   : > { %p371_p10 = pnand %p851_p6, %p370_p9 }
  0x12   : > { %p428_p11 = scmp.lt.s32.totalorder (!%p371_p10), %s1026_s16, 1  ;;  %s1282_s0 = sld [smem:[#allocation7_spill]] (!%p371_p10) }
  0x13   : > { %374 = sbr.rel (%p371_p10) target bundleno = 533 (0x215), region = 60  ;;  %s1283_s1 = sld [smem:[#allocation8_spill]] (!%p371_p10) }
  0x14   : > { %s869_s21 = sshll.u32 (!%p371_p10), %s1026_s16, 7 }
  0x15   : > { %s728_s27 = scalar_lea.hbm (!%p371_p10), %s1273_s10, %s869_s21 }
  0x18   : > { %v463_v0 = vld [vmem:[%s1269_s6 + $0x8] sm:$0xff]  ;;  %v1036_v1 = vmov 0   ;;  %v1037_v2 = vmov 0.0   ;;  %s429_s29 = scalar_select %p428_p11, %s1026_s16, 1  ;;  %v462_v3 = vld [vmem:[%s1269_s6] sm:$0xff]  ;;  %vm1038_vm0 = vmmov 0   ;;  %v454_v8 = vlaneseq }
  0x19   : > { %950 = vset.pattern.permute.xlu0 %v1036_v1  ;;  %875 = vmatprep.subr.mxu0 %v1037_v2  ;;  %vm608_vm2 = vcmask 130048   ;;  %v859_v12 = vld [vmem:[%s1267_s4] ss:$0 sm:$0xff]  ;;  %v1039_v24 = vmov 920167782  }
  0x1a   : > { %876 = vmatpush3.msra.mxu0 %v463_v0  ;;  %951 = vset.pattern.permute.xlu1 %v1036_v1  ;;  %s853_s12 = sshll.u32 %s429_s29, 3  ;;  %v455_v9 = vand.u32 127, %v454_v8  ;;  %v860_v15 = vld [vmem:[%s1268_s5] ss:$0 sm:$0xff]  ;;  %v1040_v26 = vmov 1326507024  }
  0x1b   : > { %877 = vmatprep.subr.mxu0 %v1037_v2  ;;  %879 = vmatprep.mubr.msk.f32.mxu0 %vm1038_vm0, %v1037_v2  ;;  %s434_s22 = scalar_lea.vmem %s1282_s0, %s853_s12  ;;  %s448_s28 = scalar_lea.vmem %s1265_s2, %s853_s12  ;;  %v1041_v29 = vmov 2102212464   ;;  %v1042_v33 = vmov 2475754826   ;;  %v1043_v35 = vmov 2131351028  }
  0x1c   : > { %878 = vmatpush3.msra.mxu0 %v462_v3  ;;  %v453_v4 = vld [vmem:[%s434_s22] sm:$0xff]  ;;  %s441_s30 = scalar_lea.vmem %s1283_s1, %s853_s12  ;;  %v1044_v40 = vmov 683565275   ;;  %s1045_s29 = smov [#allocation2]  }
  0x1d   : > { %457 = vperm.xlu0 %950, %v453_v4   ;;  %v482_v5 = vld [vmem:[%s448_s28] sm:$0xff]  ;;  %s425_s28 = sand.u32 1, %s1018_s14   ;;  %s962_s11 = sshll.u32 %s1045_s29, 4  ;;  %s963_s11 = int_to_ptr.vmem [resolvable:$false] %s962_s11 }
  0x1e   : > { %v464_v6 = vld [vmem:[%s441_s30] sm:$0xff]  ;;  %s852_s30 = sshll.u32 %s425_s28, 3  ;;  %s716_s0 = scalar_lea.sflag [#allocation3], %s425_s28 }
  0x1f   : > { %vm465_vm1 = vcmp.eq.s32.totalorder %v464_v6, 0  ;;  %s427_s12 = scalar_lea.vmem [#allocation2], %s852_s30  ;;  %s964_s16 = scalar_lea.vmem %s963_s11, 256 }
  0x20   : > { %v468_v7 = vsel %vm465_vm1, 1, %v1036_v1  ;;  %s730_s20 = sshll.u32 %s427_s12, 4  ;;  %s731_s20 = int_to_ptr.vmem [resolvable:$true] %s730_s20 }
  0x21   : > { %486 = vperm.xlu0 %950, %v482_v5   ;;  %470 = vperm.xlu1 %951, %v468_v7   ;;  %s958_s1 = scalar_lea.vmem %s731_s20, 128  ;;  %p965_p1 = scmp.lt.s32.totalorder %s731_s20, %s963_s11 }
  0x22   : > { %p959_p12 = scmp.ne.s32.totalorder %s731_s20, %s958_s1  ;;  %p966_p2 = scmp.lt.s32.totalorder %s964_s16, %s958_s1 }
  0x24   : > { %p960_p13 = pnand %p959_p12, %p1141_p4  ;;  %p967_p3 = por %p966_p2, %p965_p1 }
  0x26   : > { %p961_p0 = pneg %p960_p13 }
  0x28   : > { %p968_p5 = pnand %p967_p3, %p961_p0 }
  0x98   : > { %v458_v10 = vpop.permute.xlu0 %457 }
  0x99   : > { %vm459_vm3 = vcmp.eq.s32.totalorder %v458_v10, %v455_v9 }
  0x9a   : > { %v856_v11 = vsel %vm459_vm3, 1.0, %v1037_v2 }
  0x9b   : > { %880 = vmatmul.mubr.msk.f32.vlgmr.msra.gmra.mxu0 %vm608_vm2, %v856_v11 }
  0x9c   : > { %v487_v13 = vpop.permute.xlu0 %486 }
  0x9d   : > { %v495_v14 = vmul.f32 %v859_v12, %v487_v13 }
  0x9f   : > { %v1179_v16 = vadd.f32 %v860_v15, %v495_v14 }
  0xa1   : > { %v507_v17 = vand.u32 2139095040, %v1179_v16  ;;  %v504_v31 = vand.u32 2147483647, %v1179_v16  ;;  %vm506_vm11 = vcmp.lt.s32.totalorder %v1179_v16, 0  ;;  %vm596_vm1 = vweird.f32 %v1179_v16 }
  0xa3   : > { %v508_v18 = vshrl.u32 %v507_v17, 23  ;;  %v511_v44 = vand.u32 8388607, %v504_v31  ;;  %vm505_vm12 = vcmp.le.f32.partialorder %v504_v31, 0.7853982 }
  0xa4   : > { %v858_v31 = vld [vmem:[%s1270_s7 + $0x1] ss:$0 sm:$0xff] }
  0xa5   : > { %v861_v19 = vadd.s32 4294967169, %v508_v18  ;;  %v512_v50 = vor.u32 8388608, %v511_v44 }
  0xa7   : > { %v514_v20 = vadd.s32 1, %v861_v19  ;;  %v552_v57 = vshll.u32 %v512_v50, 8 }
  0xa9   : > { %vm515_vm4 = vcmp.gt.s32.totalorder %v514_v20, 0 }
  0xaa   : > { %v516_v21 = vsel %vm515_vm4, %v514_v20, 0 }
  0xab   : > { %v518_v22 = vand.u32 31, %v516_v21  ;;  %v517_v28 = vshrl.u32 %v516_v21, 5 }
  0xad   : > { %v519_v23 = vsub.s32 32, %v518_v22  ;;  %v530_v30 = vshll.u32 %v1041_v29, %v518_v22  ;;  %v533_v32 = vshll.u32 %v1039_v24, %v518_v22  ;;  %v521_v41 = vshll.u32 %v1044_v40, %v518_v22 }
  0xae   : > { %v524_v42 = vshll.u32 %v1042_v33, %v518_v22  ;;  %v527_v43 = vshll.u32 %v1043_v35, %v518_v22  ;;  %vm539_vm5 = vcmp.lt.s32.totalorder %v517_v28, 4  ;;  %vm536_vm6 = vcmp.lt.s32.totalorder %v517_v28, 1 }
  0xaf   : > { %v531_v25 = vshrl.u32 %v1039_v24, %v519_v23  ;;  %v534_v27 = vshrl.u32 %v1040_v26, %v519_v23  ;;  %v522_v34 = vshrl.u32 %v1042_v33, %v519_v23  ;;  %v525_v36 = vshrl.u32 %v1043_v35, %v519_v23 }
  0xb0   : > { %v528_v37 = vshrl.u32 %v1041_v29, %v519_v23  ;;  %vm538_vm7 = vcmp.lt.s32.totalorder %v517_v28, 3  ;;  %vm537_vm8 = vcmp.lt.s32.totalorder %v517_v28, 2  ;;  %v520_v63 = vshrl.u32 %v1044_v40, %v519_v23  ;;  %v471_v40 = vpop.permute.xlu1 %470 }
  0xb1   : > { %v532_v38 = vor.u32 %v531_v25, %v530_v30  ;;  %v535_v39 = vor.u32 %v534_v27, %v533_v32  ;;  %v523_v45 = vor.u32 %v522_v34, %v521_v41  ;;  %v526_v46 = vor.u32 %v525_v36, %v524_v42 }
  0xb2   : > { %v529_v47 = vor.u32 %v528_v37, %v527_v43  ;;  %v857_v43 = vld [vmem:[%s1270_s7] ss:$0 sm:$0xff]  ;;  %vm472_vm13 = vcmp.eq.s32.totalorder %v471_v40, 1 }
  0xb3   : > { %v545_v48 = vsel %vm539_vm5, %v532_v38, 920167782  ;;  %v549_v49 = vsel %vm539_vm5, %v535_v39, 1326507024  ;;  %v544_v51 = vsel %vm536_vm6, %v523_v45, %v526_v46  ;;  %v540_v0 = vsel %vm536_vm6, %v520_v63, %v523_v45 }
  0xb4   : > { %v546_v52 = vsel %vm538_vm7, %v529_v47, %v545_v48  ;;  %v548_v53 = vsel %vm536_vm6, %v526_v46, %v529_v47  ;;  %v550_v54 = vsel %vm538_vm7, %v532_v38, %v549_v49  ;;  %v541_v62 = vsel %vm539_vm5, %v529_v47, 2102212464 }
  0xb5   : > { %v547_v55 = vsel %vm537_vm8, %v544_v51, %v546_v52  ;;  %v551_v56 = vsel %vm537_vm8, %v548_v53, %v550_v54  ;;  %v542_v1 = vsel %vm538_vm7, %v526_v46, %v541_v62  ;;  %v481_v46 = vsel %vm472_vm13, %v857_v43, %v858_v31  ;;  %v683_v52 = vld [vmem:[%s1266_s3] sm:$0xff] }
  0xb6   : > { %v1191_v58 = vmul.u32.u64.low %v552_v57, %v547_v55  ;;  %v1192_v59 = vmul.u32.u64.high %v552_v57, %v547_v55, %v1191_v58  ;;  %v1194_v60 = vmul.u32.u64.low %v552_v57, %v551_v56  ;;  %v1195_v61 = vmul.u32.u64.high %v552_v57, %v551_v56, %v1194_v60 }
  0xb7   : > { %v543_v3 = vsel %vm537_vm8, %v540_v0, %v542_v1  ;;  %v866_v0 = vld [vmem:[%s1271_s8] ss:$0 sm:$0xff] }
  0xb8   : > { %v562_v2 = vadd.s32 1, %v1192_v59  ;;  %vm561_vm9 = vc.u32 %v1195_v61, %v1191_v58  ;;  %v559_v5 = vmul.u32 %v552_v57, %v543_v3  ;;  %v560_v20 = vadd.s32 %v1191_v58, %v1195_v61 }
  0xba   : > { %v563_v4 = vsel %vm561_vm9, %v562_v2, %v1192_v59  ;;  %v867_v2 = vld [vmem:[%s1272_s9] ss:$0 sm:$0xff] }
  0xbb   : > { %v564_v6 = vadd.s32 %v563_v4, %v559_v5 }
  0xbd   : > { %v565_v7 = vadd.s32 536870912, %v564_v6 }
  0xbf   : > { %v566_v8 = vshrl.u32 %v565_v7, 30 }
  0xc1   : > { %v567_v9 = vshll.u32 %v566_v8, 30  ;;  %v590_v33 = vsub.s32 4, %v566_v8 }
  0xc3   : > { %v568_v10 = vsub.s32 %v564_v6, %v567_v9  ;;  %v591_v34 = vsel %vm506_vm11, %v590_v33, %v566_v8 }
  0xc4   : > { %v593_v35 = vsel %vm505_vm12, 0, %v591_v34 }
  0xc5   : > { %v570_v11 = vsub.s32 0, %v568_v10  ;;  %v597_v36 = vadd.s32 3, %v593_v35 }
  0xc7   : > { %v862_v12 = vmin.u32 %v570_v11, %v568_v10  ;;  %v598_v39 = vand.u32 3, %v597_v36 }
  0xc9   : > { %v572_v13 = vclz %v862_v12  ;;  %vm600_vm14 = vcmp.eq.s32.totalorder %v598_v39, 0  ;;  %vm603_vm15 = vcmp.eq.s32.totalorder %v598_v39, 2  ;;  %vm599_vm0 = vcmp.lt.s32.totalorder %v598_v39, 2 }
  0xcb   : > { %v863_v14 = vadd.s32 4294967294, %v572_v13 }
  0xcd   : > { %vm864_vm10 = vcmp.lt.s32.totalorder %v863_v14, 0 }
  0xce   : > { %v575_v15 = vsel %vm864_vm10, 0, %v863_v14 }
  0xcf   : > { %v580_v17 = vsub.s32 4294967266, %v575_v15  ;;  %v576_v19 = vsub.s32 32, %v575_v15  ;;  %v577_v23 = vshll.u32 %v568_v10, %v575_v15 }
  0xd1   : > { %v581_v18 = vadd.s32 127, %v580_v17  ;;  %v578_v22 = vshrl.u32 %v560_v20, %v576_v19 }
  0xd3   : > { %v582_v21 = vshll.u32 %v581_v18, 23  ;;  %v579_v25 = vor.u32 %v578_v22, %v577_v23 }
  0xd5   : > { %v583_v24 = vor.u32 4788187, %v582_v21  ;;  %v586_v27 = vcvt.s32.f32 %v579_v25 }
  0xd7   : > { %v584_v26 = vand.u32 2147483647, %v583_v24 }
  0xd9   : > { %v587_v28 = vmul.f32 %v586_v27, %v584_v26 }
  0xdb   : > { %v588_v29 = vxor.u32 2147483648, %v587_v28 }
  0xdd   : > { %v589_v30 = vsel %vm506_vm11, %v588_v29, %v587_v28 }
  0xde   : > { %v592_v32 = vsel %vm505_vm12, %v1179_v16, %v589_v30 }
  0xdf   : > { %952 = vcosq.f32 %v592_v32 }
  0xe0   : > { %954 = vsinq.f32 %v592_v32 }
  0xec   : > { %v953_v37 = vpop.eup %952 }
  0xed   : > { %v955_v38 = vpop.eup %954  ;;  %v604_v42 = vxor.u32 2147483648, %v953_v37 }
  0xee   : > { %v601_v41 = vxor.u32 2147483648, %v955_v38 }
  0xef   : > { %v605_v45 = vsel %vm603_vm15, %v604_v42, %v955_v38 }
  0xf0   : > { %v602_v44 = vsel %vm600_vm14, %v953_v37, %v601_v41 }
  0xf1   : > { %v606_v47 = vsel %vm599_vm0, %v602_v44, %v605_v45 }
  0xf2   : > { %v607_v50 = vsel %vm596_vm1, nan, %v606_v47 }
 0x15b   : > { %v678_v48 = vpop.f32.mrf.mxu0 }
 0x15c   : > { %v679_v49 = vadd.f32 %v678_v48, %v481_v46 }
 0x15d   : > { %v881_v51 = vpop.f32.mrf.mxu0 }
 0x15e   : > { %v682_v53 = vadd.f32 %v679_v49, %v607_v50 }
 0x160   : > { %v684_v54 = vadd.f32 %v683_v52, %v682_v53 }
 0x162   : > { %685 = vadd.xlane.f32.xlu1 %v684_v54  ;;  %v687_v55 = vmul.f32 %v684_v54, %v684_v54 }
 0x164   : > { %688 = vadd.xlane.f32.xlu0 %v687_v55 }
 0x1eb   : > { %v686_v56 = vpop.xlane.xlu1 %685 }
 0x1ec   : > { %v690_v57 = vmul.f32 0.0078125, %v686_v56 }
 0x1ed   : > { %v689_v58 = vpop.xlane.xlu0 %688 }
 0x1ee   : > { %v692_v59 = vmul.f32 %v690_v57, %v690_v57  ;;  %v691_v60 = vmul.f32 0.0078125, %v689_v58  ;;  %v696_v62 = vsub.f32 %v684_v54, %v690_v57 }
 0x1f0   : > { %v693_v16 = vsub.f32 %v691_v60, %v692_v59 }
 0x1f2   : > { %v694_v61 = vadd.f32 1e-05, %v693_v16 }
 0x1f4   : > { %956 = vrsqrt.f32 %v694_v61 }
 0x201   : > { %v957_v63 = vpop.eup %956 }
 0x202   : > { %v697_v1 = vmul.f32 %v957_v63, %v696_v62 }
 0x204   : > { %v705_v3 = vmul.f32 %v866_v0, %v697_v1 }
 0x206   : > { %v713_v4 = vadd.f32 %v867_v2, %v705_v3 }
 0x208   : > { %714 = vst [vmem:[%s427_s12] sm:$0xff] %v713_v4 }
 0x209   : > { %971 = shalt.err (!%p968_p5)
}
 0x20a   : > { %s972_s30 = scalar_lea.hbm %s728_s27, 128  ;;  %s976_s17 = scalar_lea.hbm %s1273_s10, 256 }
 0x20b   : > { %p973_p6 = scmp.ne.s32.totalorder %s728_s27, %s972_s30  ;;  %p977_p10 = scmp.lt.s32.totalorder %s728_s27, %s1273_s10 }
 0x20c   : > { %p978_p11 = scmp.lt.s32.totalorder %s976_s17, %s972_s30 }
 0x20d   : > { %p974_p7 = pnand %p973_p6, %p1141_p4 }
 0x20e   : > { %p979_p12 = por %p978_p11, %p977_p10 }
 0x20f   : > { %p975_p9 = pneg %p974_p7 }
 0x211   : > { %p980_p13 = pnand %p979_p12, %p975_p9 }
 0x213   : > { %983 = shalt.err (!%p980_p13)
}
 0x214   : > { %886 = dma.vmem_to_hbm [thread:$0]  (%p1141_p4), %s731_s20, 128, %s728_s27, %s716_s0  }
 0x215 PF: > { %p892_p0 = scmp.ge.s32.totalorder %s1034_s18, 2  ;;  %s742_s1 = sand.u32 1, %s1014_s13  }
 0x216   : > { %s743_s22 = scalar_lea.sflag [#allocation3], %s742_s1 }
 0x217   : > { %p889_p1 = pnand %p892_p0, %p1148_p8 }
 0x219   : > { %p890_p2 = pneg %p889_p1 }
 0x21b   : > { %1009 = dma.done.wait (%p890_p2), %s743_s22, 128  }
 0x21c   : > { %1011 = vsyncadd (%p890_p2), %s743_s22, 4294967168  ;;  %s23_s18 = sadd.s32 1, %s1034_s18   ;;  %s1284_s16 = sld [smem:[#allocation5_spill]] }
 0x21d   : > { %p20_p3 = scmp.ge.s32.totalorder %s23_s18, 4   ;;  %s1285_s17 = sld [smem:[#allocation6_spill]] }
 0x21e   : > { %s1286_s13 = smov %s1018_s14  ;;  %s1287_s14 = smov %s1022_s15 }
 0x21f   : > { %s1288_s15 = smov %s1154_s26  ;;  %22 = sbr.rel (!%p20_p3) target bundleno = 7 (0x7), region = 104 }
 0x224   :  { %748 = vsyncpa [#allocation3], 1 }
 0x225   :  { %750 = vsyncpa [#allocation3 + $0x1], 1 }

</bundles_post_ra>
